<compile_context>
chip_gen: v5e
topology: v5e:2x2
jax: 0.10.0
libtpu: 0.0.40
codegen_flags: <defaults>
</compile_context>

<pallas_src>
import functools

import jax
import jax.numpy as jnp
from jax import lax
from jax.experimental import pallas as pl
from jax.experimental.pallas import tpu as pltpu

# ---- module constants (consistent with the PyTorch module) ----
NUM_ATOMIC_NUMBER = 119
NUM_ATOM_HYBRIDIZATION = 9
NUM_ATOM_AROMATICITY = 2
NUM_ATOM_CHIRALITY = 4
NUM_ATOM_CHARGE = 9
NUM_BOND_TYPE = 22
NUM_BOND_ATOM_I = NUM_ATOMIC_NUMBER

EDGE_BLOCK = 8   # sublane-aligned edge block for the in-kernel gather loop


# ----------------------------- fused Pallas kernel ---------------------------
def fused_mp_energy_kernel(src_ref,        # SMEM (E,)   int32 source node per edge
                           x0_ref,         # VMEM (N, D) f32   initial node embedding
                           edge_emb_ref,   # VMEM (E, D) f32   edge embedding (zero-padded rows)
                           dstT_ref,       # VMEM (N, E) bf16  scatter 0/1 matrix
                           pool_ref,       # VMEM (G, N) bf16  pooling 0/1 matrix
                           w1_ref, b1_ref, # VMEM (D, D), (1, D)
                           w2_ref, b2_ref, # VMEM (D, D2), (1, D2)
                           w3t_ref,        # VMEM (1, D2)      final weight row
                           out_ref,        # VMEM (G, 1) f32
                           x_scr,          # VMEM (N, D) f32 scratch node state
                           msg_scr,        # VMEM (E, D) f32 scratch messages
                           *, num_layer, num_edge_blocks):
    # Node state stays resident in VMEM across all MP layers.
    x_scr[...] = x0_ref[...]

    # Gather x[src[e]] one 8-edge block at a time.  The 8 row copies inside a
    # block body are independent (distinct destination rows), so they can be
    # overlapped; the aligned base gives statically-known store sublanes.
    def gather_block(blk, carry):
        base = pl.multiple_of(blk * EDGE_BLOCK, EDGE_BLOCK)
        for r in range(EDGE_BLOCK):                    # static unroll of 8
            s = src_ref[base + r]                      # SMEM scalar index
            msg_scr[pl.ds(base + r, 1), :] = x_scr[pl.ds(s, 1), :]
        return carry

    for _ in range(num_layer):                         # static, small (default 2)
        lax.fori_loop(0, num_edge_blocks, gather_block, 0)

        # message(): msg[e] = x[src[e]] * edge_emb[e] -- single vectorized pass
        msg_scr[...] = msg_scr[...] * edge_emb_ref[...]

        # scatter-add over dst (0/1 matrix exact in bf16; f32 accumulation)
        agg = jnp.dot(dstT_ref[...].astype(jnp.float32), msg_scr[...],
                      preferred_element_type=jnp.float32)            # (N, D)
        x_scr[...] = x_scr[...] + agg                                 # residual

    # energy_lin: ReLU -> Linear(D,D) -> ReLU -> Linear(D,D/2) -> ReLU
    h = jnp.maximum(x_scr[...], 0.0)
    h = jnp.dot(h, w1_ref[...], preferred_element_type=jnp.float32) + b1_ref[...]
    h = jnp.maximum(h, 0.0)
    h = jnp.dot(h, w2_ref[...], preferred_element_type=jnp.float32) + b2_ref[...]
    h = jnp.maximum(h, 0.0)                                           # (N, D/2)

    # global_add_pool + Linear(D/2, 1, bias=False), re-associated as
    # (pool @ h) . w3 : wide MXU matmul + tiny VPU/XLU row-dot.
    pooled = jnp.dot(pool_ref[...].astype(jnp.float32), h,
                     preferred_element_type=jnp.float32)              # (G, D/2)
    out_ref[...] = jnp.sum(pooled * w3t_ref[...], axis=-1, keepdims=True)


def fused_forward(params, node_emb, edge_emb, src, dst, batch, num_graphs,
                  num_layer):
    n, d = node_emb.shape
    d2 = params["w2"].shape[1]

    # Pad edge count to a multiple of EDGE_BLOCK; padded edges use src=dst=0
    # and zero edge embedding, so their messages are exactly zero.
    e_raw = edge_emb.shape[0]
    e = ((e_raw + EDGE_BLOCK - 1) // EDGE_BLOCK) * EDGE_BLOCK
    pad = e - e_raw
    if pad:
        src = jnp.concatenate([src, jnp.zeros((pad,), src.dtype)])
        dst = jnp.concatenate([dst, jnp.zeros((pad,), dst.dtype)])
        edge_emb = jnp.concatenate(
            [edge_emb, jnp.zeros((pad, d), edge_emb.dtype)], axis=0)

    # Structural 0/1 matrices (exact in bf16) -- only scatter & pool are
    # densified; the gather uses SMEM indices instead of a dense matrix.
    dstT = (jnp.arange(n, dtype=dst.dtype)[:, None] == dst[None, :]).astype(jnp.bfloat16)      # (N, E)
    pool = (jnp.arange(num_graphs, dtype=batch.dtype)[:, None] == batch[None, :]).astype(jnp.bfloat16)  # (G, N)
    w3t = params["w3"].reshape(1, d2)                                  # (1, D/2)

    flops_per_layer = 2 * n * e * d + 2 * e * d + n * d
    mlp_flops = (2 * n * d * d + 2 * n * d * d2 + 2 * num_graphs * n * d2
                 + 2 * num_graphs * d2)
    bytes_accessed = (4 * e + 4 * n * d + 4 * e * d + 2 * n * e
                      + 2 * num_graphs * n + 4 * d * d + 4 * d + 4 * d * d2
                      + 4 * d2 + 4 * d2 + 4 * num_graphs)
    cost = pl.CostEstimate(flops=num_layer * flops_per_layer + mlp_flops,
                           transcendentals=0,
                           bytes_accessed=bytes_accessed)

    kernel = functools.partial(fused_mp_energy_kernel,
                               num_layer=num_layer,
                               num_edge_blocks=e // EDGE_BLOCK)

    vmem = pl.BlockSpec(memory_space=pltpu.MemorySpace.VMEM)
    smem = pl.BlockSpec(memory_space=pltpu.MemorySpace.SMEM)

    return pl.pallas_call(
        kernel,
        out_shape=jax.ShapeDtypeStruct((num_graphs, 1), jnp.float32),
        in_specs=[smem] + [vmem] * 9,
        out_specs=vmem,
        scratch_shapes=[pltpu.VMEM((n, d), jnp.float32),
                        pltpu.VMEM((e, d), jnp.float32)],
        cost_estimate=cost,
    )(src.astype(jnp.int32),
      node_emb.astype(jnp.float32),
      edge_emb.astype(jnp.float32),
      dstT, pool,
      params["w1"], params["b1"], params["w2"], params["b2"], w3t)


# --------------------------- parameter construction --------------------------
def kaiming_uniform(key, shape, fan_in):
    # nn.init.kaiming_uniform_(..., nonlinearity='relu'): bound = sqrt(6 / fan_in)
    bound = (6.0 / fan_in) ** 0.5
    return jax.random.uniform(key, shape, jnp.float32, -bound, bound)


def init_params(key, emb_dim):
    d = emb_dim
    d2 = emb_dim // 2
    ks = jax.random.split(key, 16)
    params = {
        # node embedding tables
        "atom_number": kaiming_uniform(ks[0], (NUM_ATOMIC_NUMBER, d), d),
        "atom_hyb":    kaiming_uniform(ks[1], (NUM_ATOM_HYBRIDIZATION, d), d),
        "atom_arom":   kaiming_uniform(ks[2], (NUM_ATOM_AROMATICITY, d), d),
        "atom_chir":   kaiming_uniform(ks[3], (NUM_ATOM_CHIRALITY, d), d),
        "atom_charge": kaiming_uniform(ks[4], (NUM_ATOM_CHARGE, d), d),
        # edge embedding tables
        "bond_type":   kaiming_uniform(ks[5], (NUM_BOND_TYPE, d), d),
        "bond_atom_i": kaiming_uniform(ks[6], (NUM_BOND_ATOM_I, d), d),
        "sl_atomtype": kaiming_uniform(ks[7], (NUM_ATOMIC_NUMBER, d), d),
        "sl":          kaiming_uniform(ks[8], (1, d), d),
        # energy_lin: Linear(d,d), Linear(d,d//2), Linear(d//2,1,bias=False)
        # weights stored transposed (in, out) for row-major matmul.
        "w1": kaiming_uniform(ks[9], (d, d), d),
        "b1": jax.random.uniform(ks[10], (1, d), jnp.float32,
                                 -(1.0 / d) ** 0.5, (1.0 / d) ** 0.5),
        "w2": kaiming_uniform(ks[11], (d, d2), d),
        "b2": jax.random.uniform(ks[12], (1, d2), jnp.float32,
                                 -(1.0 / d) ** 0.5, (1.0 / d) ** 0.5),
        "w3": kaiming_uniform(ks[13], (d2, 1), d2),
    }
    return params


# --------------------------------- forward -----------------------------------
def old_mp_network_forward(params, atom, bond_index, bond_attr, batch,
                           num_graphs, num_layer=2):
    n = atom.shape[0]

    # Step 1: embed atoms to nodes (sum of 5 embedding lookups) -- JAX glue.
    node_emb = (params["atom_number"][atom[:, 0]]
                + params["atom_hyb"][atom[:, 1]]
                + params["atom_arom"][atom[:, 2]]
                + params["atom_chir"][atom[:, 3]]
                + params["atom_charge"][atom[:, 4]])

    # Step 2: embed bonds to edges; append self-loops (add_self_loops order).
    bond_emb = params["bond_type"][bond_attr[:, 0]] + params["bond_atom_i"][bond_attr[:, 1]]
    self_loop_emb = params["sl_atomtype"][atom[:, 0]] + params["sl"][jnp.zeros((n,), jnp.int32)]
    edge_emb = jnp.concatenate([bond_emb, self_loop_emb], axis=0)

    src = jnp.concatenate([bond_index[0], jnp.arange(n, dtype=bond_index.dtype)])
    dst = jnp.concatenate([bond_index[1], jnp.arange(n, dtype=bond_index.dtype)])

    # Steps 3-5: message passing layers + energy MLP + pool, fused in one call.
    return fused_forward(params, node_emb, edge_emb, src, dst, batch,
                         num_graphs, num_layer)


# pure-JAX reference for correctness check
def reference_forward(params, atom, bond_index, bond_attr, batch, num_graphs,
                      num_layer=2):
    n = atom.shape[0]
    node_emb = (params["atom_number"][atom[:, 0]]
                + params["atom_hyb"][atom[:, 1]]
                + params["atom_arom"][atom[:, 2]]
                + params["atom_chir"][atom[:, 3]]
                + params["atom_charge"][atom[:, 4]])
    bond_emb = params["bond_type"][bond_attr[:, 0]] + params["bond_atom_i"][bond_attr[:, 1]]
    self_loop_emb = params["sl_atomtype"][atom[:, 0]] + params["sl"][jnp.zeros((n,), jnp.int32)]
    edge_emb = jnp.concatenate([bond_emb, self_loop_emb], axis=0)
    src = jnp.concatenate([bond_index[0], jnp.arange(n, dtype=bond_index.dtype)])
    dst = jnp.concatenate([bond_index[1], jnp.arange(n, dtype=bond_index.dtype)])
    x = node_emb
    for _ in range(num_layer):
        msg = x[src] * edge_emb
        x = x + jnp.zeros_like(x).at[dst].add(msg)
    h = jnp.maximum(x, 0.0)
    h = jnp.maximum(h @ params["w1"] + params["b1"], 0.0)
    h = jnp.maximum(h @ params["w2"] + params["b2"], 0.0)
    e = h @ params["w3"]
    return jnp.zeros((num_graphs, 1), jnp.float32).at[batch].add(e)


if __name__ == "__main__":
    EMB_DIM = 128     # lane-aligned stand-in for the default 600 (use 640 at scale)
    NUM_LAYER = 2
    N_NODES = 16
    N_BONDS = 22      # directed bond edges (E = 22 + 16 self loops = 38 -> padded to 40)
    N_GRAPHS = 2

    key = jax.random.PRNGKey(0)
    k_par, k_a0, k_a1, k_a2, k_a3, k_a4, k_ei, k_b0, k_b1 = jax.random.split(key, 9)

    params = init_params(k_par, EMB_DIM)

    # data.x : (N, 5) integer atom features
    atom = jnp.stack([
        jax.random.randint(k_a0, (N_NODES,), 1, NUM_ATOMIC_NUMBER),
        jax.random.randint(k_a1, (N_NODES,), 0, NUM_ATOM_HYBRIDIZATION),
        jax.random.randint(k_a2, (N_NODES,), 0, NUM_ATOM_AROMATICITY),
        jax.random.randint(k_a3, (N_NODES,), 0, NUM_ATOM_CHIRALITY),
        jax.random.randint(k_a4, (N_NODES,), 0, NUM_ATOM_CHARGE),
    ], axis=1).astype(jnp.int32)

    # data.edge_index : (2, E) directed edges
    bond_index = jax.random.randint(k_ei, (2, N_BONDS), 0, N_NODES).astype(jnp.int32)

    # data.edge_attr : (E, 2) integer bond features
    bond_attr = jnp.stack([
        jax.random.randint(k_b0, (N_BONDS,), 0, NUM_BOND_TYPE),
        jax.random.randint(k_b1, (N_BONDS,), 0, NUM_BOND_ATOM_I),
    ], axis=1).astype(jnp.int32)

    # data.batch : graph id per node
    batch = jnp.concatenate([
        jnp.zeros((N_NODES // 2,), jnp.int32),
        jnp.ones((N_NODES - N_NODES // 2,), jnp.int32),
    ])

    dg = old_mp_network_forward(params, atom, bond_index, bond_attr, batch,
                                N_GRAPHS, NUM_LAYER)
    dg = jax.block_until_ready(dg)

    dg_ref = reference_forward(params, atom, bond_index, bond_attr, batch,
                               N_GRAPHS, NUM_LAYER)
    assert dg.shape == (N_GRAPHS, 1)
    assert jnp.allclose(dg, dg_ref, rtol=1e-4, atol=1e-3), (dg, dg_ref)

    print("KERNEL_OK")
</pallas_src>

<mosaic_0001>
module attributes {stable_mosaic.version = 11 : i64} {
  func.func @fused_mp_energy_kernel(%arg0: memref<40xi32, #tpu.memory_space<smem>>, %arg1: memref<16x128xf32, #tpu.memory_space<vmem>>, %arg2: memref<40x128xf32, #tpu.memory_space<vmem>>, %arg3: memref<16x40xbf16, #tpu.memory_space<vmem>>, %arg4: memref<2x16xbf16, #tpu.memory_space<vmem>>, %arg5: memref<128x128xf32, #tpu.memory_space<vmem>>, %arg6: memref<1x128xf32, #tpu.memory_space<vmem>>, %arg7: memref<128x64xf32, #tpu.memory_space<vmem>>, %arg8: memref<1x64xf32, #tpu.memory_space<vmem>>, %arg9: memref<1x64xf32, #tpu.memory_space<vmem>>, %arg10: memref<2x1xf32, #tpu.memory_space<vmem>>, %arg11: memref<16x128xf32, #tpu.memory_space<vmem>>, %arg12: memref<40x128xf32, #tpu.memory_space<vmem>>) attributes {dimension_semantics = [], scalar_prefetch = 0 : i64, scratch_operands = 2 : i64, tpu.core_type = #tpu.core_type<tc>} {
    %c0 = arith.constant 0 : index
    %c0_0 = arith.constant 0 : index
    %0 = vector.load %arg1[%c0, %c0_0] : memref<16x128xf32, #tpu.memory_space<vmem>>, vector<16x128xf32>
    %c0_1 = arith.constant 0 : index
    %c0_2 = arith.constant 0 : index
    %1 = vector.load %arg11[%c0_1, %c0_2] : memref<16x128xf32, #tpu.memory_space<vmem>>, vector<16x128xf32>
    tpu.vector_store %arg11[%c0_1, %c0_2], %0 {strides = array<i32>} : memref<16x128xf32, #tpu.memory_space<vmem>>, vector<16x128xf32>,
    %c0_i32 = arith.constant 0 : i32
    %c5_i32 = arith.constant 5 : i32
    %2 = arith.addi %c0_i32, %c5_i32 : i32
    %c1_i32 = arith.constant 1 : i32
    scf.for %arg13 = %c0_i32 to %2 step %c1_i32  : i32 {
      %c8_i32 = arith.constant 8 : i32
      %52 = arith.muli %arg13, %c8_i32 : i32
      %53 = tpu.assume_multiple %52, 8 : i32
      %c0_i32_60 = arith.constant 0 : i32
      %54 = arith.addi %53, %c0_i32_60 : i32
      %55 = arith.index_cast %54 : i32 to index
      %56 = memref.load %arg0[%55] : memref<40xi32, #tpu.memory_space<smem>>
      %57 = arith.index_cast %56 : i32 to index
      %c0_61 = arith.constant 0 : index
      %58 = vector.load %arg11[%57, %c0_61] : memref<16x128xf32, #tpu.memory_space<vmem>>, vector<1x128xf32>
      %c0_i32_62 = arith.constant 0 : i32
      %59 = arith.addi %53, %c0_i32_62 : i32
      %60 = arith.index_cast %59 : i32 to index
      %c0_63 = arith.constant 0 : index
      %61 = vector.load %arg12[%60, %c0_63] : memref<40x128xf32, #tpu.memory_space<vmem>>, vector<1x128xf32>
      tpu.vector_store %arg12[%60, %c0_63], %58 {strides = array<i32>} : memref<40x128xf32, #tpu.memory_space<vmem>>, vector<1x128xf32>,
      %c1_i32_64 = arith.constant 1 : i32
      %62 = arith.addi %53, %c1_i32_64 : i32
      %63 = arith.index_cast %62 : i32 to index
      %64 = memref.load %arg0[%63] : memref<40xi32, #tpu.memory_space<smem>>
      %65 = arith.index_cast %64 : i32 to index
      %c0_65 = arith.constant 0 : index
      %66 = vector.load %arg11[%65, %c0_65] : memref<16x128xf32, #tpu.memory_space<vmem>>, vector<1x128xf32>
      %c1_i32_66 = arith.constant 1 : i32
      %67 = arith.addi %53, %c1_i32_66 : i32
      %68 = arith.index_cast %67 : i32 to index
      %c0_67 = arith.constant 0 : index
      %69 = vector.load %arg12[%68, %c0_67] : memref<40x128xf32, #tpu.memory_space<vmem>>, vector<1x128xf32>
      tpu.vector_store %arg12[%68, %c0_67], %66 {strides = array<i32>} : memref<40x128xf32, #tpu.memory_space<vmem>>, vector<1x128xf32>,
      %c2_i32 = arith.constant 2 : i32
      %70 = arith.addi %53, %c2_i32 : i32
      %71 = arith.index_cast %70 : i32 to index
      %72 = memref.load %arg0[%71] : memref<40xi32, #tpu.memory_space<smem>>
      %73 = arith.index_cast %72 : i32 to index
      %c0_68 = arith.constant 0 : index
      %74 = vector.load %arg11[%73, %c0_68] : memref<16x128xf32, #tpu.memory_space<vmem>>, vector<1x128xf32>
      %c2_i32_69 = arith.constant 2 : i32
      %75 = arith.addi %53, %c2_i32_69 : i32
      %76 = arith.index_cast %75 : i32 to index
      %c0_70 = arith.constant 0 : index
      %77 = vector.load %arg12[%76, %c0_70] : memref<40x128xf32, #tpu.memory_space<vmem>>, vector<1x128xf32>
      tpu.vector_store %arg12[%76, %c0_70], %74 {strides = array<i32>} : memref<40x128xf32, #tpu.memory_space<vmem>>, vector<1x128xf32>,
      %c3_i32 = arith.constant 3 : i32
      %78 = arith.addi %53, %c3_i32 : i32
      %79 = arith.index_cast %78 : i32 to index
      %80 = memref.load %arg0[%79] : memref<40xi32, #tpu.memory_space<smem>>
      %81 = arith.index_cast %80 : i32 to index
      %c0_71 = arith.constant 0 : index
      %82 = vector.load %arg11[%81, %c0_71] : memref<16x128xf32, #tpu.memory_space<vmem>>, vector<1x128xf32>
      %c3_i32_72 = arith.constant 3 : i32
      %83 = arith.addi %53, %c3_i32_72 : i32
      %84 = arith.index_cast %83 : i32 to index
      %c0_73 = arith.constant 0 : index
      %85 = vector.load %arg12[%84, %c0_73] : memref<40x128xf32, #tpu.memory_space<vmem>>, vector<1x128xf32>
      tpu.vector_store %arg12[%84, %c0_73], %82 {strides = array<i32>} : memref<40x128xf32, #tpu.memory_space<vmem>>, vector<1x128xf32>,
      %c4_i32 = arith.constant 4 : i32
      %86 = arith.addi %53, %c4_i32 : i32
      %87 = arith.index_cast %86 : i32 to index
      %88 = memref.load %arg0[%87] : memref<40xi32, #tpu.memory_space<smem>>
      %89 = arith.index_cast %88 : i32 to index
      %c0_74 = arith.constant 0 : index
      %90 = vector.load %arg11[%89, %c0_74] : memref<16x128xf32, #tpu.memory_space<vmem>>, vector<1x128xf32>
      %c4_i32_75 = arith.constant 4 : i32
      %91 = arith.addi %53, %c4_i32_75 : i32
      %92 = arith.index_cast %91 : i32 to index
      %c0_76 = arith.constant 0 : index
      %93 = vector.load %arg12[%92, %c0_76] : memref<40x128xf32, #tpu.memory_space<vmem>>, vector<1x128xf32>
      tpu.vector_store %arg12[%92, %c0_76], %90 {strides = array<i32>} : memref<40x128xf32, #tpu.memory_space<vmem>>, vector<1x128xf32>,
      %c5_i32_77 = arith.constant 5 : i32
      %94 = arith.addi %53, %c5_i32_77 : i32
      %95 = arith.index_cast %94 : i32 to index
      %96 = memref.load %arg0[%95] : memref<40xi32, #tpu.memory_space<smem>>
      %97 = arith.index_cast %96 : i32 to index
      %c0_78 = arith.constant 0 : index
      %98 = vector.load %arg11[%97, %c0_78] : memref<16x128xf32, #tpu.memory_space<vmem>>, vector<1x128xf32>
      %c5_i32_79 = arith.constant 5 : i32
      %99 = arith.addi %53, %c5_i32_79 : i32
      %100 = arith.index_cast %99 : i32 to index
      %c0_80 = arith.constant 0 : index
      %101 = vector.load %arg12[%100, %c0_80] : memref<40x128xf32, #tpu.memory_space<vmem>>, vector<1x128xf32>
      tpu.vector_store %arg12[%100, %c0_80], %98 {strides = array<i32>} : memref<40x128xf32, #tpu.memory_space<vmem>>, vector<1x128xf32>,
      %c6_i32 = arith.constant 6 : i32
      %102 = arith.addi %53, %c6_i32 : i32
      %103 = arith.index_cast %102 : i32 to index
      %104 = memref.load %arg0[%103] : memref<40xi32, #tpu.memory_space<smem>>
      %105 = arith.index_cast %104 : i32 to index
      %c0_81 = arith.constant 0 : index
      %106 = vector.load %arg11[%105, %c0_81] : memref<16x128xf32, #tpu.memory_space<vmem>>, vector<1x128xf32>
      %c6_i32_82 = arith.constant 6 : i32
      %107 = arith.addi %53, %c6_i32_82 : i32
      %108 = arith.index_cast %107 : i32 to index
      %c0_83 = arith.constant 0 : index
      %109 = vector.load %arg12[%108, %c0_83] : memref<40x128xf32, #tpu.memory_space<vmem>>, vector<1x128xf32>
      tpu.vector_store %arg12[%108, %c0_83], %106 {strides = array<i32>} : memref<40x128xf32, #tpu.memory_space<vmem>>, vector<1x128xf32>,
      %c7_i32 = arith.constant 7 : i32
      %110 = arith.addi %53, %c7_i32 : i32
      %111 = arith.index_cast %110 : i32 to index
      %112 = memref.load %arg0[%111] : memref<40xi32, #tpu.memory_space<smem>>
      %113 = arith.index_cast %112 : i32 to index
      %c0_84 = arith.constant 0 : index
      %114 = vector.load %arg11[%113, %c0_84] : memref<16x128xf32, #tpu.memory_space<vmem>>, vector<1x128xf32>
      %c7_i32_85 = arith.constant 7 : i32
      %115 = arith.addi %53, %c7_i32_85 : i32
      %116 = arith.index_cast %115 : i32 to index
      %c0_86 = arith.constant 0 : index
      %117 = vector.load %arg12[%116, %c0_86] : memref<40x128xf32, #tpu.memory_space<vmem>>, vector<1x128xf32>
      tpu.vector_store %arg12[%116, %c0_86], %114 {strides = array<i32>} : memref<40x128xf32, #tpu.memory_space<vmem>>, vector<1x128xf32>,
    }
    %c5_i32_3 = arith.constant 5 : i32
    %c0_4 = arith.constant 0 : index
    %c0_5 = arith.constant 0 : index
    %3 = vector.load %arg12[%c0_4, %c0_5] : memref<40x128xf32, #tpu.memory_space<vmem>>, vector<40x128xf32>
    %c0_6 = arith.constant 0 : index
    %c0_7 = arith.constant 0 : index
    %4 = vector.load %arg2[%c0_6, %c0_7] : memref<40x128xf32, #tpu.memory_space<vmem>>, vector<40x128xf32>
    %5 = arith.mulf %3, %4 : vector<40x128xf32>
    %c0_8 = arith.constant 0 : index
    %c0_9 = arith.constant 0 : index
    %6 = vector.load %arg12[%c0_8, %c0_9] : memref<40x128xf32, #tpu.memory_space<vmem>>, vector<40x128xf32>
    tpu.vector_store %arg12[%c0_8, %c0_9], %5 {strides = array<i32>} : memref<40x128xf32, #tpu.memory_space<vmem>>, vector<40x128xf32>,
    %c0_10 = arith.constant 0 : index
    %c0_11 = arith.constant 0 : index
    %7 = vector.load %arg3[%c0_10, %c0_11] : memref<16x40xbf16, #tpu.memory_space<vmem>>, vector<16x40xbf16>
    %8 = arith.extf %7 : vector<16x40xbf16> to vector<16x40xf32>
    %c0_12 = arith.constant 0 : index
    %c0_13 = arith.constant 0 : index
    %9 = vector.load %arg12[%c0_12, %c0_13] : memref<40x128xf32, #tpu.memory_space<vmem>>, vector<40x128xf32>
    %cst = arith.constant dense<0.000000e+00> : vector<16x128xf32>
    %10 = tpu.matmul %8, %9, %cst {dimension_numbers = #tpu.dot_dimension_numbers<[1], [0], [0], [1], [0, 0, 1, 1], [], []>} : vector<16x40xf32>, vector<40x128xf32>, vector<16x128xf32> -> vector<16x128xf32>
    %c0_14 = arith.constant 0 : index
    %c0_15 = arith.constant 0 : index
    %11 = vector.load %arg11[%c0_14, %c0_15] : memref<16x128xf32, #tpu.memory_space<vmem>>, vector<16x128xf32>
    %12 = arith.addf %11, %10 : vector<16x128xf32>
    %c0_16 = arith.constant 0 : index
    %c0_17 = arith.constant 0 : index
    %13 = vector.load %arg11[%c0_16, %c0_17] : memref<16x128xf32, #tpu.memory_space<vmem>>, vector<16x128xf32>
    tpu.vector_store %arg11[%c0_16, %c0_17], %12 {strides = array<i32>} : memref<16x128xf32, #tpu.memory_space<vmem>>, vector<16x128xf32>,
    %c0_i32_18 = arith.constant 0 : i32
    %c5_i32_19 = arith.constant 5 : i32
    %14 = arith.addi %c0_i32_18, %c5_i32_19 : i32
    %c1_i32_20 = arith.constant 1 : i32
    scf.for %arg13 = %c0_i32_18 to %14 step %c1_i32_20  : i32 {
      %c8_i32 = arith.constant 8 : i32
      %52 = arith.muli %arg13, %c8_i32 : i32
      %53 = tpu.assume_multiple %52, 8 : i32
      %c0_i32_60 = arith.constant 0 : i32
      %54 = arith.addi %53, %c0_i32_60 : i32
      %55 = arith.index_cast %54 : i32 to index
      %56 = memref.load %arg0[%55] : memref<40xi32, #tpu.memory_space<smem>>
      %57 = arith.index_cast %56 : i32 to index
      %c0_61 = arith.constant 0 : index
      %58 = vector.load %arg11[%57, %c0_61] : memref<16x128xf32, #tpu.memory_space<vmem>>, vector<1x128xf32>
      %c0_i32_62 = arith.constant 0 : i32
      %59 = arith.addi %53, %c0_i32_62 : i32
      %60 = arith.index_cast %59 : i32 to index
      %c0_63 = arith.constant 0 : index
      %61 = vector.load %arg12[%60, %c0_63] : memref<40x128xf32, #tpu.memory_space<vmem>>, vector<1x128xf32>
      tpu.vector_store %arg12[%60, %c0_63], %58 {strides = array<i32>} : memref<40x128xf32, #tpu.memory_space<vmem>>, vector<1x128xf32>,
      %c1_i32_64 = arith.constant 1 : i32
      %62 = arith.addi %53, %c1_i32_64 : i32
      %63 = arith.index_cast %62 : i32 to index
      %64 = memref.load %arg0[%63] : memref<40xi32, #tpu.memory_space<smem>>
      %65 = arith.index_cast %64 : i32 to index
      %c0_65 = arith.constant 0 : index
      %66 = vector.load %arg11[%65, %c0_65] : memref<16x128xf32, #tpu.memory_space<vmem>>, vector<1x128xf32>
      %c1_i32_66 = arith.constant 1 : i32
      %67 = arith.addi %53, %c1_i32_66 : i32
      %68 = arith.index_cast %67 : i32 to index
      %c0_67 = arith.constant 0 : index
      %69 = vector.load %arg12[%68, %c0_67] : memref<40x128xf32, #tpu.memory_space<vmem>>, vector<1x128xf32>
      tpu.vector_store %arg12[%68, %c0_67], %66 {strides = array<i32>} : memref<40x128xf32, #tpu.memory_space<vmem>>, vector<1x128xf32>,
      %c2_i32 = arith.constant 2 : i32
      %70 = arith.addi %53, %c2_i32 : i32
      %71 = arith.index_cast %70 : i32 to index
      %72 = memref.load %arg0[%71] : memref<40xi32, #tpu.memory_space<smem>>
      %73 = arith.index_cast %72 : i32 to index
      %c0_68 = arith.constant 0 : index
      %74 = vector.load %arg11[%73, %c0_68] : memref<16x128xf32, #tpu.memory_space<vmem>>, vector<1x128xf32>
      %c2_i32_69 = arith.constant 2 : i32
      %75 = arith.addi %53, %c2_i32_69 : i32
      %76 = arith.index_cast %75 : i32 to index
      %c0_70 = arith.constant 0 : index
      %77 = vector.load %arg12[%76, %c0_70] : memref<40x128xf32, #tpu.memory_space<vmem>>, vector<1x128xf32>
      tpu.vector_store %arg12[%76, %c0_70], %74 {strides = array<i32>} : memref<40x128xf32, #tpu.memory_space<vmem>>, vector<1x128xf32>,
      %c3_i32 = arith.constant 3 : i32
      %78 = arith.addi %53, %c3_i32 : i32
      %79 = arith.index_cast %78 : i32 to index
      %80 = memref.load %arg0[%79] : memref<40xi32, #tpu.memory_space<smem>>
      %81 = arith.index_cast %80 : i32 to index
      %c0_71 = arith.constant 0 : index
      %82 = vector.load %arg11[%81, %c0_71] : memref<16x128xf32, #tpu.memory_space<vmem>>, vector<1x128xf32>
      %c3_i32_72 = arith.constant 3 : i32
      %83 = arith.addi %53, %c3_i32_72 : i32
      %84 = arith.index_cast %83 : i32 to index
      %c0_73 = arith.constant 0 : index
      %85 = vector.load %arg12[%84, %c0_73] : memref<40x128xf32, #tpu.memory_space<vmem>>, vector<1x128xf32>
      tpu.vector_store %arg12[%84, %c0_73], %82 {strides = array<i32>} : memref<40x128xf32, #tpu.memory_space<vmem>>, vector<1x128xf32>,
      %c4_i32 = arith.constant 4 : i32
      %86 = arith.addi %53, %c4_i32 : i32
      %87 = arith.index_cast %86 : i32 to index
      %88 = memref.load %arg0[%87] : memref<40xi32, #tpu.memory_space<smem>>
      %89 = arith.index_cast %88 : i32 to index
      %c0_74 = arith.constant 0 : index
      %90 = vector.load %arg11[%89, %c0_74] : memref<16x128xf32, #tpu.memory_space<vmem>>, vector<1x128xf32>
      %c4_i32_75 = arith.constant 4 : i32
      %91 = arith.addi %53, %c4_i32_75 : i32
      %92 = arith.index_cast %91 : i32 to index
      %c0_76 = arith.constant 0 : index
      %93 = vector.load %arg12[%92, %c0_76] : memref<40x128xf32, #tpu.memory_space<vmem>>, vector<1x128xf32>
      tpu.vector_store %arg12[%92, %c0_76], %90 {strides = array<i32>} : memref<40x128xf32, #tpu.memory_space<vmem>>, vector<1x128xf32>,
      %c5_i32_77 = arith.constant 5 : i32
      %94 = arith.addi %53, %c5_i32_77 : i32
      %95 = arith.index_cast %94 : i32 to index
      %96 = memref.load %arg0[%95] : memref<40xi32, #tpu.memory_space<smem>>
      %97 = arith.index_cast %96 : i32 to index
      %c0_78 = arith.constant 0 : index
      %98 = vector.load %arg11[%97, %c0_78] : memref<16x128xf32, #tpu.memory_space<vmem>>, vector<1x128xf32>
      %c5_i32_79 = arith.constant 5 : i32
      %99 = arith.addi %53, %c5_i32_79 : i32
      %100 = arith.index_cast %99 : i32 to index
      %c0_80 = arith.constant 0 : index
      %101 = vector.load %arg12[%100, %c0_80] : memref<40x128xf32, #tpu.memory_space<vmem>>, vector<1x128xf32>
      tpu.vector_store %arg12[%100, %c0_80], %98 {strides = array<i32>} : memref<40x128xf32, #tpu.memory_space<vmem>>, vector<1x128xf32>,
      %c6_i32 = arith.constant 6 : i32
      %102 = arith.addi %53, %c6_i32 : i32
      %103 = arith.index_cast %102 : i32 to index
      %104 = memref.load %arg0[%103] : memref<40xi32, #tpu.memory_space<smem>>
      %105 = arith.index_cast %104 : i32 to index
      %c0_81 = arith.constant 0 : index
      %106 = vector.load %arg11[%105, %c0_81] : memref<16x128xf32, #tpu.memory_space<vmem>>, vector<1x128xf32>
      %c6_i32_82 = arith.constant 6 : i32
      %107 = arith.addi %53, %c6_i32_82 : i32
      %108 = arith.index_cast %107 : i32 to index
      %c0_83 = arith.constant 0 : index
      %109 = vector.load %arg12[%108, %c0_83] : memref<40x128xf32, #tpu.memory_space<vmem>>, vector<1x128xf32>
      tpu.vector_store %arg12[%108, %c0_83], %106 {strides = array<i32>} : memref<40x128xf32, #tpu.memory_space<vmem>>, vector<1x128xf32>,
      %c7_i32 = arith.constant 7 : i32
      %110 = arith.addi %53, %c7_i32 : i32
      %111 = arith.index_cast %110 : i32 to index
      %112 = memref.load %arg0[%111] : memref<40xi32, #tpu.memory_space<smem>>
      %113 = arith.index_cast %112 : i32 to index
      %c0_84 = arith.constant 0 : index
      %114 = vector.load %arg11[%113, %c0_84] : memref<16x128xf32, #tpu.memory_space<vmem>>, vector<1x128xf32>
      %c7_i32_85 = arith.constant 7 : i32
      %115 = arith.addi %53, %c7_i32_85 : i32
      %116 = arith.index_cast %115 : i32 to index
      %c0_86 = arith.constant 0 : index
      %117 = vector.load %arg12[%116, %c0_86] : memref<40x128xf32, #tpu.memory_space<vmem>>, vector<1x128xf32>
      tpu.vector_store %arg12[%116, %c0_86], %114 {strides = array<i32>} : memref<40x128xf32, #tpu.memory_space<vmem>>, vector<1x128xf32>,
    }
    %c5_i32_21 = arith.constant 5 : i32
    %c0_22 = arith.constant 0 : index
    %c0_23 = arith.constant 0 : index
    %15 = vector.load %arg12[%c0_22, %c0_23] : memref<40x128xf32, #tpu.memory_space<vmem>>, vector<40x128xf32>
    %c0_24 = arith.constant 0 : index
    %c0_25 = arith.constant 0 : index
    %16 = vector.load %arg2[%c0_24, %c0_25] : memref<40x128xf32, #tpu.memory_space<vmem>>, vector<40x128xf32>
    %17 = arith.mulf %15, %16 : vector<40x128xf32>
    %c0_26 = arith.constant 0 : index
    %c0_27 = arith.constant 0 : index
    %18 = vector.load %arg12[%c0_26, %c0_27] : memref<40x128xf32, #tpu.memory_space<vmem>>, vector<40x128xf32>
    tpu.vector_store %arg12[%c0_26, %c0_27], %17 {strides = array<i32>} : memref<40x128xf32, #tpu.memory_space<vmem>>, vector<40x128xf32>,
    %c0_28 = arith.constant 0 : index
    %c0_29 = arith.constant 0 : index
    %19 = vector.load %arg3[%c0_28, %c0_29] : memref<16x40xbf16, #tpu.memory_space<vmem>>, vector<16x40xbf16>
    %20 = arith.extf %19 : vector<16x40xbf16> to vector<16x40xf32>
    %c0_30 = arith.constant 0 : index
    %c0_31 = arith.constant 0 : index
    %21 = vector.load %arg12[%c0_30, %c0_31] : memref<40x128xf32, #tpu.memory_space<vmem>>, vector<40x128xf32>
    %cst_32 = arith.constant dense<0.000000e+00> : vector<16x128xf32>
    %22 = tpu.matmul %20, %21, %cst_32 {dimension_numbers = #tpu.dot_dimension_numbers<[1], [0], [0], [1], [0, 0, 1, 1], [], []>} : vector<16x40xf32>, vector<40x128xf32>, vector<16x128xf32> -> vector<16x128xf32>
    %c0_33 = arith.constant 0 : index
    %c0_34 = arith.constant 0 : index
    %23 = vector.load %arg11[%c0_33, %c0_34] : memref<16x128xf32, #tpu.memory_space<vmem>>, vector<16x128xf32>
    %24 = arith.addf %23, %22 : vector<16x128xf32>
    %c0_35 = arith.constant 0 : index
    %c0_36 = arith.constant 0 : index
    %25 = vector.load %arg11[%c0_35, %c0_36] : memref<16x128xf32, #tpu.memory_space<vmem>>, vector<16x128xf32>
    tpu.vector_store %arg11[%c0_35, %c0_36], %24 {strides = array<i32>} : memref<16x128xf32, #tpu.memory_space<vmem>>, vector<16x128xf32>,
    %c0_37 = arith.constant 0 : index
    %c0_38 = arith.constant 0 : index
    %26 = vector.load %arg11[%c0_37, %c0_38] : memref<16x128xf32, #tpu.memory_space<vmem>>, vector<16x128xf32>
    %cst_39 = arith.constant 0.000000e+00 : f32
    %27 = vector.broadcast %cst_39 : f32 to vector<16x128xf32>
    %28 = arith.maximumf %26, %27 : vector<16x128xf32>
    %c0_40 = arith.constant 0 : index
    %c0_41 = arith.constant 0 : index
    %29 = vector.load %arg5[%c0_40, %c0_41] : memref<128x128xf32, #tpu.memory_space<vmem>>, vector<128x128xf32>
    %cst_42 = arith.constant dense<0.000000e+00> : vector<16x128xf32>
    %30 = tpu.matmul %28, %29, %cst_42 {dimension_numbers = #tpu.dot_dimension_numbers<[1], [0], [0], [1], [0, 0, 1, 1], [], []>} : vector<16x128xf32>, vector<128x128xf32>, vector<16x128xf32> -> vector<16x128xf32>
    %c0_43 = arith.constant 0 : index
    %c0_44 = arith.constant 0 : index
    %31 = vector.load %arg6[%c0_43, %c0_44] : memref<1x128xf32, #tpu.memory_space<vmem>>, vector<1x128xf32>
    %32 = vector.broadcast %31 : vector<1x128xf32> to vector<16x128xf32>
    %33 = arith.addf %30, %32 : vector<16x128xf32>
    %cst_45 = arith.constant 0.000000e+00 : f32
    %34 = vector.broadcast %cst_45 : f32 to vector<16x128xf32>
    %35 = arith.maximumf %33, %34 : vector<16x128xf32>
    %c0_46 = arith.constant 0 : index
    %c0_47 = arith.constant 0 : index
    %36 = vector.load %arg7[%c0_46, %c0_47] : memref<128x64xf32, #tpu.memory_space<vmem>>, vector<128x64xf32>
    %cst_48 = arith.constant dense<0.000000e+00> : vector<16x64xf32>
    %37 = tpu.matmul %35, %36, %cst_48 {dimension_numbers = #tpu.dot_dimension_numbers<[1], [0], [0], [1], [0, 0, 1, 1], [], []>} : vector<16x128xf32>, vector<128x64xf32>, vector<16x64xf32> -> vector<16x64xf32>
    %c0_49 = arith.constant 0 : index
    %c0_50 = arith.constant 0 : index
    %38 = vector.load %arg8[%c0_49, %c0_50] : memref<1x64xf32, #tpu.memory_space<vmem>>, vector<1x64xf32>
    %39 = vector.broadcast %38 : vector<1x64xf32> to vector<16x64xf32>
    %40 = arith.addf %37, %39 : vector<16x64xf32>
    %cst_51 = arith.constant 0.000000e+00 : f32
    %41 = vector.broadcast %cst_51 : f32 to vector<16x64xf32>
    %42 = arith.maximumf %40, %41 : vector<16x64xf32>
    %c0_52 = arith.constant 0 : index
    %c0_53 = arith.constant 0 : index
    %43 = vector.load %arg4[%c0_52, %c0_53] : memref<2x16xbf16, #tpu.memory_space<vmem>>, vector<2x16xbf16>
    %44 = arith.extf %43 : vector<2x16xbf16> to vector<2x16xf32>
    %cst_54 = arith.constant dense<0.000000e+00> : vector<2x64xf32>
    %45 = tpu.matmul %44, %42, %cst_54 {dimension_numbers = #tpu.dot_dimension_numbers<[1], [0], [0], [1], [0, 0, 1, 1], [], []>} : vector<2x16xf32>, vector<16x64xf32>, vector<2x64xf32> -> vector<2x64xf32>
    %c0_55 = arith.constant 0 : index
    %c0_56 = arith.constant 0 : index
    %46 = vector.load %arg9[%c0_55, %c0_56] : memref<1x64xf32, #tpu.memory_space<vmem>>, vector<1x64xf32>
    %47 = vector.broadcast %46 : vector<1x64xf32> to vector<2x64xf32>
    %48 = arith.mulf %45, %47 : vector<2x64xf32>
    %cst_57 = arith.constant dense<0.000000e+00> : vector<2xf32>
    %49 = vector.multi_reduction <add>, %48, %cst_57 [1] : vector<2x64xf32> to vector<2xf32>
    %50 = vector.shape_cast %49 : vector<2xf32> to vector<2x1xf32>
    %c0_58 = arith.constant 0 : index
    %c0_59 = arith.constant 0 : index
    %51 = vector.load %arg10[%c0_58, %c0_59] : memref<2x1xf32, #tpu.memory_space<vmem>>, vector<2x1xf32>
    tpu.vector_store %arg10[%c0_58, %c0_59], %50 {strides = array<i32>} : memref<2x1xf32, #tpu.memory_space<vmem>>, vector<2x1xf32>,
    return
  }
}

</mosaic_0001>

<bundles_post_ra>
// kernel: tpu_custom_call.1
= control target key start
LH: loop header
LB: loop body
LE: loop exit
PB: predicated region body
PF: predicated region fallthrough
CT: control target
= control target key end

     0   :  { %15 = vsyncpa [#allocation5], 0  ;;  %s590_s16 = smov [#allocation4]   ;;  %s824_s0 = inlined_call_operand.vmem [shape: s32[40], index: 0, kind: input, shape index: {}]   ;;  %s825_s1 = inlined_call_operand.vmem [shape: f32[16,128], index: 1, kind: input, shape index: {}]   ;;  %s826_s2 = inlined_call_operand.vmem [shape: f32[40,128], index: 2, kind: input, shape index: {}]   ;;  %s827_s3 = inlined_call_operand.vmem [shape: bf16[16,40], index: 3, kind: input, shape index: {}]   ;;  %s828_s4 = inlined_call_operand.vmem [shape: bf16[2,16], index: 4, kind: input, shape index: {}]   ;;  %s829_s5 = inlined_call_operand.vmem [shape: f32[128,128], index: 5, kind: input, shape index: {}]   ;;  %s830_s6 = inlined_call_operand.vmem [shape: f32[1,128], index: 6, kind: input, shape index: {}]   ;;  %s831_s7 = inlined_call_operand.vmem [shape: f32[128,64], index: 7, kind: input, shape index: {}]   ;;  %s832_s8 = inlined_call_operand.vmem [shape: f32[1,64], index: 8, kind: input, shape index: {}]   ;;  %s833_s9 = inlined_call_operand.vmem [shape: f32[1,64], index: 9, kind: input, shape index: {}]   ;;  %s834_s10 = inlined_call_operand.vmem [shape: f32[2,1], index: 10, kind: output, shape index: {}]  }
   0x1   :  { %s21_s15 = sshll.u32 %s824_s0, 4  ;;  %s22_s15 = int_to_ptr.vmem [resolvable:$true] %s21_s15 }
   0x2   :  { %24 = dma.vmem_to_smem %s22_s15, 16, %s590_s16, [#allocation5]  }
   0x3   :  { %580 = dma.done.wait [#allocation5], 16  }
   0x4   :  { %581 = vsyncadd [#allocation5], 4294967280 }
   0x5   :  { %47 = sfence }
   0x6   :  { %v48_v0 = vld [vmem:[%s825_s1] sm:$0xff]  ;;  %v49_v1 = vld [vmem:[%s825_s1 + $0x8] sm:$0xff]  ;;  %s655_s21 = smov 0  }
   0x7   :  { %50 = vst [vmem:[#allocation2] sm:$0xff] %v48_v0 }
   0x8   :  { %51 = vst [vmem:[#allocation2 + $0x8] sm:$0xff] %v49_v1 }
   0x9 LB: > { %s497_s0 = sshll.u32 %s584_s21, 3  ;;  %s57_s21 = sadd.s32 1, %s584_s21   ;;  %s584_s21 = sphi %s655_s21, %s57_s21  }
   0xa   : > { %s59_s22 = sld [smem:[#allocation4 + %s497_s0]]  ;;  %s64_s23 = sadd.s32 1, %s497_s0 }
   0xb   : > { %s70_s24 = sadd.s32 2, %s497_s0  ;;  %s65_s25 = sld [smem:[#allocation4 + %s64_s23]] }
   0xc   : > { %s76_s26 = sadd.s32 3, %s497_s0  ;;  %s71_s27 = sld [smem:[#allocation4 + %s70_s24]] }
   0xd   : > { %s82_s28 = sadd.s32 4, %s497_s0  ;;  %s77_s29 = sld [smem:[#allocation4 + %s76_s26]] }
   0xe   : > { %s88_s1 = sadd.s32 5, %s497_s0  ;;  %s83_s30 = sld [smem:[#allocation4 + %s82_s28]] }
   0xf   : > { %s94_s11 = sadd.s32 6, %s497_s0  ;;  %s89_s12 = sld [smem:[#allocation4 + %s88_s1]] }
  0x10   : > { %s60_s13 = scalar_lea.vmem [#allocation2], %s59_s22  ;;  %s95_s14 = sld [smem:[#allocation4 + %s94_s11]] }
  0x11   : > { %v61_v2 = vld [vmem:[%s60_s13] sm:$0x1]  ;;  %s100_s15 = sadd.s32 7, %s497_s0  ;;  %s62_s16 = scalar_lea.vmem [#allocation3], %s497_s0 }
  0x12   : > { %63 = vst [vmem:[%s62_s16] sm:$0x1] %v61_v2  ;;  %s101_s17 = sld [smem:[#allocation4 + %s100_s15]]  ;;  %s66_s18 = scalar_lea.vmem [#allocation2], %s65_s25 }
  0x13   : > { %v67_v3 = vld [vmem:[%s66_s18] sm:$0x1]  ;;  %s72_s19 = scalar_lea.vmem [#allocation2], %s71_s27  ;;  %s78_s20 = scalar_lea.vmem [#allocation2], %s77_s29 }
  0x14   : > { %499 = vst [vmem:[%s62_s16 + $0x1] sm:$0x1] %v67_v3  ;;  %v73_v4 = vld [vmem:[%s72_s19] sm:$0x1]  ;;  %s84_s23 = scalar_lea.vmem [#allocation2], %s83_s30  ;;  %p54_p0 = scmp.ge.s32.totalorder %s57_s21, 5  }
  0x15   : > { %501 = vst [vmem:[%s62_s16 + $0x2] sm:$0x1] %v73_v4  ;;  %v79_v5 = vld [vmem:[%s78_s20] sm:$0x1]  ;;  %s90_s24 = scalar_lea.vmem [#allocation2], %s89_s12  ;;  %v114_v14 = vld [vmem:[%s826_s2 + $0x18] sm:$0xff] (%p54_p0) }
  0x16   : > { %503 = vst [vmem:[%s62_s16 + $0x3] sm:$0x1] %v79_v5  ;;  %v85_v6 = vld [vmem:[%s84_s23] sm:$0x1]  ;;  %s96_s22 = scalar_lea.vmem [#allocation2], %s95_s14  ;;  %56 = sbr.rel (!%p54_p0) target bundleno = 9 (0x9), region = 110 }
  0x17   : > { %505 = vst [vmem:[%s62_s16 + $0x4] sm:$0x1] %v85_v6  ;;  %v91_v7 = vld [vmem:[%s90_s24] sm:$0x1]  ;;  %v113_v16 = vld [vmem:[%s826_s2 + $0x10] sm:$0xff] (%p54_p0)  ;;  %v112_v19 = vld [vmem:[%s826_s2 + $0x8] sm:$0xff] (%p54_p0) }
  0x18   : > { %507 = vst [vmem:[%s62_s16 + $0x5] sm:$0x1] %v91_v7  ;;  %v97_v8 = vld [vmem:[%s96_s22] sm:$0x1]  ;;  %s102_s0 = scalar_lea.vmem [#allocation2], %s101_s17  ;;  %vm135_vm0 = vcmask (%p54_p0), 326656  }
  0x19   : > { %509 = vst [vmem:[%s62_s16 + $0x6] sm:$0x1] %v97_v8  ;;  %v103_v9 = vld [vmem:[%s102_s0] sm:$0x1]  ;;  %v166_v31 = vld [vmem:[#allocation2 + $0x8] sm:$0xff] (%p54_p0)  ;;  %s684_s15 = smov (%p54_p0), 0  }
  0x1a   : > { %511 = vst [vmem:[%s62_s16 + $0x7] sm:$0x1] %v103_v9  ;;  %v115_v11 = vld [vmem:[%s826_s2 + $0x20] sm:$0xff] (%p54_p0) }
  0x1b   :  { %v111_v22 = vld [vmem:[%s826_s2] sm:$0xff] }
  0x1c   :  { %v533_v25 = vld [vmem:[%s827_s3] sm:$0xff]  }
  0x1d   :  { %v534_v26 = vunpack.c.l.bf16 %v533_v25  ;;  %v535_v27 = vunpack.c.h.bf16 %v533_v25  ;;  %v165_v28 = vld [vmem:[#allocation2] sm:$0xff] }
  0x21   :  { %v110_v10 = vld [vmem:[#allocation3 + $0x20] sm:$0xff]  ;;  %v109_v12 = vld [vmem:[#allocation3 + $0x18] sm:$0xff]  ;;  %v108_v15 = vld [vmem:[#allocation3 + $0x10] sm:$0xff] }
  0x22   :  { %v120_v13 = vmul.f32 %v115_v11, %v110_v10  ;;  %v119_v17 = vmul.f32 %v114_v14, %v109_v12  ;;  %v107_v18 = vld [vmem:[#allocation3 + $0x8] sm:$0xff]  ;;  %v106_v20 = vld [vmem:[#allocation3] sm:$0xff]  ;;  %v118_v21 = vmul.f32 %v113_v16, %v108_v15 }
  0x23   :  { %v117_v23 = vmul.f32 %v112_v19, %v107_v18  ;;  %v116_v24 = vmul.f32 %v111_v22, %v106_v20 }
  0x24   :  { %125 = vst [vmem:[#allocation3 + $0x20] sm:$0xff] %v120_v13  ;;  %153 = vmatpush.msra.mxu0 %v120_v13 }
  0x25   :  { %124 = vst [vmem:[#allocation3 + $0x18] sm:$0xff] %v119_v17 }
  0x26   :  { %154 = vmatpush.msra.mxu0 %v119_v17  ;;  %123 = vst [vmem:[#allocation3 + $0x10] sm:$0xff] %v118_v21 }
  0x27   :  { %122 = vst [vmem:[#allocation3 + $0x8] sm:$0xff] %v117_v23 }
  0x28   :  { %155 = vmatpush.msra.mxu0 %v118_v21  ;;  %121 = vst [vmem:[#allocation3] sm:$0xff] %v116_v24 }
  0x2a   :  { %156 = vmatpush.msra.mxu0 %v117_v23 }
  0x2c   :  { %157 = vmatpush.msra.mxu0 %v116_v24 }
  0x2d   :  { %512 = vmatmul.msk.f32.vlgmr.msra.gmra.mxu0 %vm135_vm0, %v534_v26 }
  0x35   :  { %513 = vmatmul.msk.f32.gmra.mxu0 %vm135_vm0, %v535_v27 }
  0xaa   :  { %v159_v29 = vpop.f32.mrf.mxu0 }
  0xab   :  { %v167_v30 = vadd.f32 %v165_v28, %v159_v29 }
  0xad   :  { %169 = vst [vmem:[#allocation2] sm:$0xff] %v167_v30 }
  0xb2   :  { %v162_v32 = vpop.f32.mrf.mxu0 }
  0xb3   :  { %v168_v33 = vadd.f32 %v166_v31, %v162_v32 }
  0xb5   :  { %170 = vst [vmem:[#allocation2 + $0x8] sm:$0xff] %v168_v33 }
  0xb6 LB: > { %s514_s16 = sshll.u32 %s588_s15, 3  ;;  %s176_s15 = sadd.s32 1, %s588_s15   ;;  %s588_s15 = sphi %s684_s15, %s176_s15  }
  0xb7   : > { %s178_s17 = sld [smem:[#allocation4 + %s514_s16]]  ;;  %s183_s18 = sadd.s32 1, %s514_s16 }
  0xb8   : > { %s189_s19 = sadd.s32 2, %s514_s16  ;;  %s184_s20 = sld [smem:[#allocation4 + %s183_s18]] }
  0xb9   : > { %s195_s23 = sadd.s32 3, %s514_s16  ;;  %s190_s24 = sld [smem:[#allocation4 + %s189_s19]] }
  0xba   : > { %s201_s22 = sadd.s32 4, %s514_s16  ;;  %s196_s0 = sld [smem:[#allocation4 + %s195_s23]] }
  0xbb   : > { %s207_s25 = sadd.s32 5, %s514_s16  ;;  %s202_s26 = sld [smem:[#allocation4 + %s201_s22]] }
  0xbc   : > { %s213_s27 = sadd.s32 6, %s514_s16  ;;  %s208_s28 = sld [smem:[#allocation4 + %s207_s25]] }
  0xbd   : > { %s179_s29 = scalar_lea.vmem [#allocation2], %s178_s17  ;;  %s214_s1 = sld [smem:[#allocation4 + %s213_s27]] }
  0xbe   : > { %v180_v34 = vld [vmem:[%s179_s29] sm:$0x1]  ;;  %s219_s21 = sadd.s32 7, %s514_s16  ;;  %s181_s30 = scalar_lea.vmem [#allocation3], %s514_s16 }
  0xbf   : > { %182 = vst [vmem:[%s181_s30] sm:$0x1] %v180_v34  ;;  %s220_s11 = sld [smem:[#allocation4 + %s219_s21]]  ;;  %s185_s12 = scalar_lea.vmem [#allocation2], %s184_s20 }
  0xc0   : > { %v186_v35 = vld [vmem:[%s185_s12] sm:$0x1]  ;;  %s191_s13 = scalar_lea.vmem [#allocation2], %s190_s24  ;;  %s197_s14 = scalar_lea.vmem [#allocation2], %s196_s0 }
  0xc1   : > { %516 = vst [vmem:[%s181_s30 + $0x1] sm:$0x1] %v186_v35  ;;  %v192_v36 = vld [vmem:[%s191_s13] sm:$0x1]  ;;  %s203_s18 = scalar_lea.vmem [#allocation2], %s202_s26  ;;  %p173_p1 = scmp.ge.s32.totalorder %s176_s15, 5  }
  0xc2   : > { %518 = vst [vmem:[%s181_s30 + $0x2] sm:$0x1] %v192_v36  ;;  %v198_v37 = vld [vmem:[%s197_s14] sm:$0x1]  ;;  %s209_s19 = scalar_lea.vmem [#allocation2], %s208_s28  ;;  %v233_v46 = vld [vmem:[%s826_s2 + $0x18] sm:$0xff] (%p173_p1) }
  0xc3   : > { %520 = vst [vmem:[%s181_s30 + $0x3] sm:$0x1] %v198_v37  ;;  %v204_v38 = vld [vmem:[%s203_s18] sm:$0x1]  ;;  %s215_s17 = scalar_lea.vmem [#allocation2], %s214_s1  ;;  %175 = sbr.rel (!%p173_p1) target bundleno = 182 (0xb6), region = 121 }
  0xc4   : > { %522 = vst [vmem:[%s181_s30 + $0x4] sm:$0x1] %v204_v38  ;;  %v210_v39 = vld [vmem:[%s209_s19] sm:$0x1]  ;;  %v232_v48 = vld [vmem:[%s826_s2 + $0x10] sm:$0xff] (%p173_p1)  ;;  %v231_v51 = vld [vmem:[%s826_s2 + $0x8] sm:$0xff] (%p173_p1) }
  0xc5   : > { %524 = vst [vmem:[%s181_s30 + $0x5] sm:$0x1] %v210_v39  ;;  %v216_v40 = vld [vmem:[%s215_s17] sm:$0x1]  ;;  %s221_s16 = scalar_lea.vmem [#allocation2], %s220_s11  ;;  %v308_v55 = vld [vmem:[%s829_s5 + $0x78] sm:$0xff] (%p173_p1) }
  0xc6   : > { %526 = vst [vmem:[%s181_s30 + $0x6] sm:$0x1] %v216_v40  ;;  %v222_v41 = vld [vmem:[%s221_s16] sm:$0x1]  ;;  %313 = vmatpush.msra.mxu2 (%p173_p1), %v308_v55  ;;  %v307_v57 = vld [vmem:[%s829_s5 + $0x70] sm:$0xff] (%p173_p1)  ;;  %v306_v60 = vld [vmem:[%s829_s5 + $0x68] sm:$0xff] (%p173_p1) }
  0xc7   : > { %528 = vst [vmem:[%s181_s30 + $0x7] sm:$0x1] %v222_v41  ;;  %v234_v43 = vld [vmem:[%s826_s2 + $0x20] sm:$0xff] (%p173_p1)  ;;  %v304_v63 = vld [vmem:[%s829_s5 + $0x58] sm:$0xff] (%p173_p1)  ;;  %v303_v0 = vld [vmem:[%s829_s5 + $0x50] sm:$0xff] (%p173_p1)  ;;  %vm385_vm1 = vcmask (%p173_p1), 130048  }
  0xc8   :  { %v230_v54 = vld [vmem:[%s826_s2] sm:$0xff]  ;;  %314 = vmatpush.msra.mxu2 %v307_v57  ;;  %v302_v1 = vld [vmem:[%s829_s5 + $0x48] sm:$0xff]  ;;  %v300_v4 = vld [vmem:[%s829_s5 + $0x38] sm:$0xff]  ;;  %vm414_vm2 = vcmask 517120   ;;  %vm418_vm3 = vcmask 1024  }
  0xc9   :  { %v537_v59 = vld [vmem:[%s827_s3] sm:$0xff]   ;;  %v299_v5 = vld [vmem:[%s829_s5 + $0x30] sm:$0xff]  ;;  %v298_v6 = vld [vmem:[%s829_s5 + $0x28] sm:$0xff] }
  0xca   :  { %v305_v61 = vld [vmem:[%s829_s5 + $0x60] sm:$0xff]  ;;  %v538_v62 = vunpack.c.l.bf16 %v537_v59  ;;  %315 = vmatpush.msra.mxu2 %v306_v60  ;;  %v539_v3 = vunpack.c.h.bf16 %v537_v59  ;;  %v296_v8 = vld [vmem:[%s829_s5 + $0x18] sm:$0xff]  ;;  %v295_v9 = vld [vmem:[%s829_s5 + $0x10] sm:$0xff] }
  0xcb   :  { %v301_v2 = vld [vmem:[%s829_s5 + $0x40] sm:$0xff]  ;;  %v294_v10 = vld [vmem:[%s829_s5 + $0x8] sm:$0xff]  ;;  %v353_v12 = vld [vmem:[%s831_s7 + $0x78] sm:$0xff] }
  0xcc   :  { %316 = vmatpush.msra.mxu2 %v305_v61  ;;  %v297_v7 = vld [vmem:[%s829_s5 + $0x20] sm:$0xff]  ;;  %v352_v13 = vld [vmem:[%s831_s7 + $0x70] sm:$0xff]  ;;  %358 = vmatpush.msra.mxu3 %v353_v12  ;;  %v351_v14 = vld [vmem:[%s831_s7 + $0x68] sm:$0xff] }
  0xcd   :  { %v293_v11 = vld [vmem:[%s829_s5] sm:$0xff]  ;;  %v349_v16 = vld [vmem:[%s831_s7 + $0x58] sm:$0xff]  ;;  %v348_v17 = vld [vmem:[%s831_s7 + $0x50] sm:$0xff] }
  0xce   :  { %v229_v42 = vld [vmem:[#allocation3 + $0x20] sm:$0xff]  ;;  %v228_v44 = vld [vmem:[#allocation3 + $0x18] sm:$0xff]  ;;  %v227_v47 = vld [vmem:[#allocation3 + $0x10] sm:$0xff]  ;;  %317 = vmatpush.msra.mxu2 %v304_v63  ;;  %359 = vmatpush.msra.mxu3 %v352_v13 }
  0xcf   :  { %v239_v45 = vmul.f32 %v234_v43, %v229_v42  ;;  %v238_v49 = vmul.f32 %v233_v46, %v228_v44  ;;  %v226_v50 = vld [vmem:[#allocation3 + $0x8] sm:$0xff]  ;;  %v225_v52 = vld [vmem:[#allocation3] sm:$0xff]  ;;  %v237_v53 = vmul.f32 %v232_v48, %v227_v47  ;;  %v350_v15 = vld [vmem:[%s831_s7 + $0x60] sm:$0xff] }
  0xd0   :  { %v236_v56 = vmul.f32 %v231_v51, %v226_v50  ;;  %v235_v58 = vmul.f32 %v230_v54, %v225_v52  ;;  %318 = vmatpush.msra.mxu2 %v303_v0  ;;  %360 = vmatpush.msra.mxu3 %v351_v14  ;;  %v347_v18 = vld [vmem:[%s831_s7 + $0x48] sm:$0xff]  ;;  %v346_v19 = vld [vmem:[%s831_s7 + $0x40] sm:$0xff]  ;;  %v345_v20 = vld [vmem:[%s831_s7 + $0x38] sm:$0xff] }
  0xd1   :  { %244 = vst [vmem:[#allocation3 + $0x20] sm:$0xff] %v239_v45  ;;  %271 = vmatpush.msra.mxu1 %v239_v45  ;;  %v344_v21 = vld [vmem:[%s831_s7 + $0x30] sm:$0xff]  ;;  %v283_v22 = vld [vmem:[#allocation2] sm:$0xff]  ;;  %v343_v23 = vld [vmem:[%s831_s7 + $0x28] sm:$0xff] }
  0xd2   :  { %243 = vst [vmem:[#allocation3 + $0x18] sm:$0xff] %v238_v49  ;;  %319 = vmatpush.msra.mxu2 %v302_v1  ;;  %361 = vmatpush.msra.mxu3 %v350_v15  ;;  %v342_v26 = vld [vmem:[%s831_s7 + $0x20] sm:$0xff]  ;;  %v341_v28 = vld [vmem:[%s831_s7 + $0x18] sm:$0xff]  ;;  %v284_v29 = vld [vmem:[#allocation2 + $0x8] sm:$0xff] }
  0xd3   :  { %272 = vmatpush.msra.mxu1 %v238_v49  ;;  %242 = vst [vmem:[#allocation3 + $0x10] sm:$0xff] %v237_v53  ;;  %v340_v33 = vld [vmem:[%s831_s7 + $0x10] sm:$0xff]  ;;  %v339_v34 = vld [vmem:[%s831_s7 + $0x8] sm:$0xff]  ;;  %v338_v35 = vld [vmem:[%s831_s7] sm:$0xff] }
  0xd4   :  { %241 = vst [vmem:[#allocation3 + $0x8] sm:$0xff] %v236_v56  ;;  %320 = vmatpush.msra.mxu2 %v301_v2  ;;  %362 = vmatpush.msra.mxu3 %v349_v16  ;;  %v557_v36 = vld [vmem:[%s830_s6] ss:$0 sm:$0xff] }
  0xd5   :  { %273 = vmatpush.msra.mxu1 %v237_v53  ;;  %240 = vst [vmem:[#allocation3] sm:$0xff] %v235_v58  ;;  %v558_v44 = vld [vmem:[%s832_s8] ss:$0 sm:$0xff] }
  0xd6   :  { %321 = vmatpush.msra.mxu2 %v300_v4  ;;  %363 = vmatpush.msra.mxu3 %v348_v17  ;;  %v383_v48 = vld [vmem:[%s828_s4] sm:$0x1] }
  0xd7   :  { %274 = vmatpush.msra.mxu1 %v236_v56  ;;  %v384_v50 = vunpack.c.l.bf16 %v383_v48  ;;  %v559_v52 = vld [vmem:[%s833_s9] ss:$0 sm:$0xff] }
  0xd8   :  { %322 = vmatpush.msra.mxu2 %v299_v5  ;;  %364 = vmatpush.msra.mxu3 %v347_v18 }
  0xd9   :  { %275 = vmatpush.msra.mxu1 %v235_v58 }
  0xda   :  { %529 = vmatmul.msk.f32.vlgmr.msra.gmra.mxu1 %vm135_vm0, %v538_v62  ;;  %323 = vmatpush.msra.mxu2 %v298_v6 }
  0xdb   :  { %365 = vmatpush.msra.mxu3 %v346_v19 }
  0xdc   :  { %324 = vmatpush.msra.mxu2 %v297_v7 }
  0xdd   :  { %366 = vmatpush.msra.mxu3 %v345_v20 }
  0xde   :  { %325 = vmatpush.msra.mxu2 %v296_v8 }
  0xdf   :  { %367 = vmatpush.msra.mxu3 %v344_v21 }
  0xe0   :  { %326 = vmatpush.msra.mxu2 %v295_v9 }
  0xe1   :  { %368 = vmatpush.msra.mxu3 %v343_v23 }
  0xe2   :  { %530 = vmatmul.msk.f32.gmra.mxu1 %vm135_vm0, %v539_v3  ;;  %327 = vmatpush.msra.mxu2 %v294_v10 }
  0xe3   :  { %369 = vmatpush.msra.mxu3 %v342_v26 }
  0xe4   :  { %328 = vmatpush.msra.mxu2 %v293_v11 }
  0xe5   :  { %370 = vmatpush.msra.mxu3 %v341_v28 }
  0xe7   :  { %371 = vmatpush.msra.mxu3 %v340_v33 }
  0xe9   :  { %372 = vmatpush.msra.mxu3 %v339_v34 }
  0xeb   :  { %373 = vmatpush.msra.mxu3 %v338_v35 }
 0x157   :  { %v277_v24 = vpop.f32.mrf.mxu1 }
 0x158   :  { %v285_v25 = vadd.f32 %v283_v22, %v277_v24 }
 0x15a   :  { %287 = vst [vmem:[#allocation2] sm:$0xff] %v285_v25  ;;  %v291_v27 = vmax.f32 %v285_v25, 0.0 }
 0x15c   :  { %329 = vmatmul.f32.vlgmr.msra.gmra.mxu2 %v291_v27 }
 0x15f   :  { %v280_v30 = vpop.f32.mrf.mxu1 }
 0x160   :  { %v286_v31 = vadd.f32 %v284_v29, %v280_v30 }
 0x162   :  { %288 = vst [vmem:[#allocation2 + $0x8] sm:$0xff] %v286_v31  ;;  %v292_v32 = vmax.f32 %v286_v31, 0.0 }
 0x164   :  { %332 = vmatmul.f32.gmra.mxu2 %v292_v32 }
 0x1df   :  { %v330_v37 = vpop.f32.mrf.mxu2 }
 0x1e0   :  { %v331_v38 = vadd.f32 %v557_v36, %v330_v37 }
 0x1e2   :  { %v336_v39 = vmax.f32 %v331_v38, 0.0 }
 0x1e4   :  { %374 = vmatmul.f32.vlgmr.msra.gmra.mxu3 %v336_v39 }
 0x1e7   :  { %v333_v40 = vpop.f32.mrf.mxu2 }
 0x1e8   :  { %v334_v41 = vadd.f32 %v557_v36, %v333_v40 }
 0x1ea   :  { %v337_v42 = vmax.f32 %v334_v41, 0.0 }
 0x1ec   :  { %377 = vmatmul.f32.gmra.mxu3 %v337_v42 }
 0x267   :  { %v375_v43 = vpop.f32.mrf.mxu3 }
 0x268   :  { %v376_v46 = vadd.f32 %v558_v44, %v375_v43 }
 0x26a   :  { %v381_v51 = vmax.f32 %v376_v46, 0.0 }
 0x26f   :  { %v378_v45 = vpop.f32.mrf.mxu3 }
 0x270   :  { %v379_v47 = vadd.f32 %v558_v44, %v378_v45 }
 0x272   :  { %v382_v49 = vmax.f32 %v379_v47, 0.0 }
 0x274   :  { %403 = vmatpush.msrb.mxu0 %v382_v49 }
 0x276   :  { %404 = vmatpush.msrb.mxu0 %v381_v51 }
 0x277   :  { %531 = vmatmul.msk.f32.vlgmr.msrb.gmra.mxu0 %vm385_vm1, %v384_v50 }
 0x2f4   :  { %v406_v53 = vpop.f32.mrf.mxu0 }
 0x2f5   :  { %v413_v54 = vmul.f32 %v559_v52, %v406_v53 }
 0x2f7   :  { %v415_v55 = vsel %vm414_vm2, %v413_v54, 0.0 }
 0x2f8   :  { %416 = vadd.xlane.f32.xlu0 %v415_v55 }
 0x36b   :  { %v417_v56 = vpop.xlane.xlu0 %416 }
 0x36c   :  { %419 = vst.msk [vmem:[%s834_s10] sm:$0x3] %vm418_vm3, %v417_v56 }
 0x36d   :  { %424 = vsyncpa [#allocation5], 1 }

</bundles_post_ra>
